<compile_context>
chip_gen: v5e
topology: v5e:2x2
jax: 0.10.0
libtpu: 0.0.40
codegen_flags: <defaults>
</compile_context>

<pallas_src>
import functools

import numpy as np

import jax
import jax.numpy as jnp
from jax import lax
from jax.experimental import pallas as pl
from jax.experimental.pallas import tpu as pltpu


def _block(dim, cap):
    """Fixed tile size: full dim if it already fits, else `cap` (a multiple of
    8/128); the ragged last block is handled by the pl.cdiv grid."""
    return dim if dim <= cap else cap


def _itemsize(dtype):
    return np.dtype(dtype).itemsize


# ---------------------------------------------------------------------------
# Kernel 1: fused linear layer  y = x @ W + b
# x: (M, K), W: (K, Nout), b: (1, Nout) -> y: (M, Nout)
# grid = (cdiv(M, tm), cdiv(Nout, tn)); K untiled (single MXU pass per tile).
# ---------------------------------------------------------------------------
def _linear_kernel(x_ref, w_ref, b_ref, o_ref, *, mxu_dtype):
    acc = jnp.dot(
        x_ref[...].astype(mxu_dtype),
        w_ref[...].astype(mxu_dtype),
        preferred_element_type=jnp.float32,
    )
    o_ref[...] = (acc + b_ref[...].astype(jnp.float32)).astype(o_ref.dtype)


def linear(x2d, w, b, *, out_dtype=None, mxu_dtype=jnp.bfloat16,
           tm_cap=256, tn_cap=256):
    M, K = x2d.shape
    Kw, Nout = w.shape
    assert K == Kw
    out_dtype = out_dtype if out_dtype is not None else x2d.dtype

    tm = _block(M, tm_cap)       # fixed tile; ragged last block via cdiv grid
    tn = _block(Nout, tn_cap)
    b2d = b.reshape(1, Nout)

    cost = pl.CostEstimate(
        flops=2 * M * K * Nout,
        transcendentals=0,
        bytes_accessed=(M * K + K * Nout + Nout) * _itemsize(x2d.dtype)
        + M * Nout * _itemsize(out_dtype),
    )

    return pl.pallas_call(
        functools.partial(_linear_kernel, mxu_dtype=mxu_dtype),
        out_shape=jax.ShapeDtypeStruct((M, Nout), out_dtype),
        grid_spec=pltpu.PrefetchScalarGridSpec(
            num_scalar_prefetch=0,
            grid=(pl.cdiv(M, tm), pl.cdiv(Nout, tn)),
            in_specs=[
                pl.BlockSpec((tm, K), lambda i, j: (i, 0)),
                pl.BlockSpec((K, tn), lambda i, j: (0, j)),
                pl.BlockSpec((1, tn), lambda i, j: (0, j)),
            ],
            out_specs=pl.BlockSpec((tm, tn), lambda i, j: (i, j)),
        ),
        compiler_params=pltpu.CompilerParams(
            dimension_semantics=("parallel", "parallel")),
        cost_estimate=cost,
    )(x2d, w, b2d)


# ---------------------------------------------------------------------------
# Kernel 2a: attention, q-tiled path (C % 128 == 0).
# grid = (B, cdiv(N, tq)). q is a (tq, C) tile; k/v are (N, C) column slabs of
# the fused qkv activation, resident across the q-tile axis. Per-head results
# are normalized and written straight into a (tq, C) f32 scratch; one cast +
# lane-dense store at the end. Softmax scale is pre-folded into q.
# ---------------------------------------------------------------------------
def _attn_qtile_kernel(q_ref, k_ref, v_ref, o_ref, acc_ref, *,
                       num_heads, head_dim, mxu_dtype):
    for h in range(num_heads):                       # static unrolled head loop
        lo = h * head_dim
        q = q_ref[0, :, lo:lo + head_dim].astype(mxu_dtype)      # (tq, Dh)
        k = k_ref[0, :, lo:lo + head_dim].astype(mxu_dtype)      # (N,  Dh)
        v = v_ref[0, :, lo:lo + head_dim].astype(mxu_dtype)      # (N,  Dh)

        # s = q @ k^T without materializing k.T (contract last axes).
        s = lax.dot_general(q, k, (((1,), (1,)), ((), ())),
                            preferred_element_type=jnp.float32)   # (tq, N)

        m = jnp.max(s, axis=-1, keepdims=True)
        p = jnp.exp(s - m)
        denom = jnp.sum(p, axis=-1, keepdims=True)

        o = jnp.dot(p.astype(mxu_dtype), v,
                    preferred_element_type=jnp.float32)           # (tq, Dh)
        acc_ref[:, lo:lo + head_dim] = o * pl.reciprocal(denom, approx=True)

    o_ref[0] = acc_ref[...].astype(o_ref.dtype)


# ---------------------------------------------------------------------------
# Kernel 2b: attention, whole-slab fallback (tiny / non-lane-aligned C).
# grid = (B,); one (N, 3C) slab per batch element, all heads per step.
# ---------------------------------------------------------------------------
def _attn_slab_kernel(qkv_ref, o_ref, acc_ref, *, num_heads, head_dim, mxu_dtype):
    C = num_heads * head_dim
    for h in range(num_heads):
        lo = h * head_dim
        q = qkv_ref[0, :, lo:lo + head_dim].astype(mxu_dtype)
        k = qkv_ref[0, :, C + lo:C + lo + head_dim].astype(mxu_dtype)
        v = qkv_ref[0, :, 2 * C + lo:2 * C + lo + head_dim].astype(mxu_dtype)

        s = lax.dot_general(q, k, (((1,), (1,)), ((), ())),
                            preferred_element_type=jnp.float32)   # (N, N)
        m = jnp.max(s, axis=-1, keepdims=True)
        p = jnp.exp(s - m)
        denom = jnp.sum(p, axis=-1, keepdims=True)

        o = jnp.dot(p.astype(mxu_dtype), v,
                    preferred_element_type=jnp.float32)           # (N, Dh)
        acc_ref[:, lo:lo + head_dim] = o * pl.reciprocal(denom, approx=True)

    o_ref[0] = acc_ref[...].astype(o_ref.dtype)


def attention(qkv3, num_heads, head_dim, out_dtype, *,
              mxu_dtype=jnp.bfloat16, tq_cap=256):
    B, N, C3 = qkv3.shape
    C = num_heads * head_dim
    assert C3 == 3 * C

    cost = pl.CostEstimate(
        flops=4 * B * num_heads * N * N * head_dim,
        transcendentals=B * num_heads * N * N,
        bytes_accessed=B * N * 3 * C * _itemsize(qkv3.dtype)
        + B * N * C * _itemsize(out_dtype),
    )

    if C % 128 == 0:
        # Lane-aligned embed dim: column-blocked q/k/v specs + q-tile grid
        # axis (second parallel axis -> both TensorCores busy at small B,
        # score matrix bounded to (tq, N) for v7x VMEM).
        tq = _block(N, tq_cap)
        return pl.pallas_call(
            functools.partial(_attn_qtile_kernel, num_heads=num_heads,
                              head_dim=head_dim, mxu_dtype=mxu_dtype),
            out_shape=jax.ShapeDtypeStruct((B, N, C), out_dtype),
            grid_spec=pltpu.PrefetchScalarGridSpec(
                num_scalar_prefetch=0,
                grid=(B, pl.cdiv(N, tq)),
                in_specs=[
                    pl.BlockSpec((1, tq, C), lambda b, qi: (b, qi, 0)),  # q tile
                    pl.BlockSpec((1, N, C), lambda b, qi: (b, 0, 1)),    # k slab (resident)
                    pl.BlockSpec((1, N, C), lambda b, qi: (b, 0, 2)),    # v slab (resident)
                ],
                out_specs=pl.BlockSpec((1, tq, C), lambda b, qi: (b, qi, 0)),
                scratch_shapes=[pltpu.VMEM((tq, C), jnp.float32)],
            ),
            compiler_params=pltpu.CompilerParams(
                dimension_semantics=("parallel", "parallel")),
            cost_estimate=cost,
        )(qkv3, qkv3, qkv3)

    # Fallback: small / unaligned C -> one slab per batch element.
    return pl.pallas_call(
        functools.partial(_attn_slab_kernel, num_heads=num_heads,
                          head_dim=head_dim, mxu_dtype=mxu_dtype),
        out_shape=jax.ShapeDtypeStruct((B, N, C), out_dtype),
        grid_spec=pltpu.PrefetchScalarGridSpec(
            num_scalar_prefetch=0,
            grid=(B,),
            in_specs=[pl.BlockSpec((1, N, 3 * C), lambda b: (b, 0, 0))],
            out_specs=pl.BlockSpec((1, N, C), lambda b: (b, 0, 0)),
            scratch_shapes=[pltpu.VMEM((N, C), jnp.float32)],
        ),
        compiler_params=pltpu.CompilerParams(
            dimension_semantics=("parallel",)),
        cost_estimate=cost,
    )(qkv3)


# ---------------------------------------------------------------------------
# Full module forward (eval mode; dropouts are identity).
# ---------------------------------------------------------------------------
def multi_head_attention_forward(x, params, num_heads, *,
                                 mxu_dtype=jnp.bfloat16,
                                 act_dtype=jnp.bfloat16,
                                 q_tile_cap=256):
    """x: (B, N, C). Matches MultiHeadAttention.forward in eval mode."""
    B, N, C = x.shape
    head_dim = C // num_heads
    scale = float(head_dim) ** -0.5

    # Fold the softmax scale into the q columns of the QKV projection
    # (removes the per-head VPU multiply inside the attention kernel).
    col_scale = jnp.concatenate(
        [jnp.full((C,), scale, params["w_qkv"].dtype),
         jnp.ones((2 * C,), params["w_qkv"].dtype)])
    w_qkv = params["w_qkv"] * col_scale[None, :]
    b_qkv = params["b_qkv"] * col_scale

    # Fused QKV projection; bf16 activation halves HBM traffic to attention.
    qkv = linear(x.reshape(B * N, C), w_qkv, b_qkv,
                 out_dtype=act_dtype, mxu_dtype=mxu_dtype)          # (B*N, 3C)

    # Free reshape only — q/k/v column slabs are sliced by BlockSpec / inside
    # the kernel, replacing the PyTorch reshape(...).permute(...) HBM copy.
    qkv3 = qkv.reshape(B, N, 3 * C)

    # Attention: output already laid out as (B, N, C).
    o = attention(qkv3, num_heads, head_dim, act_dtype,
                  mxu_dtype=mxu_dtype, tq_cap=q_tile_cap)           # (B, N, C)

    # Output projection; final result in the input dtype.
    out = linear(o.reshape(B * N, C), params["w_proj"], params["b_proj"],
                 out_dtype=x.dtype, mxu_dtype=mxu_dtype)            # (B*N, C)
    return out.reshape(B, N, C)


# Pure-JAX f32 reference for sanity checking.
def reference_forward(x, params, num_heads):
    B, N, C = x.shape
    head_dim = C // num_heads
    qkv = x @ params["w_qkv"] + params["b_qkv"]
    qkv = qkv.reshape(B, N, 3, num_heads, head_dim)
    qkv = jnp.transpose(qkv, (2, 0, 3, 1, 4))
    q, k, v = qkv[0], qkv[1], qkv[2]
    attn = jnp.einsum("bhqd,bhkd->bhqk", q, k) * (head_dim ** -0.5)
    attn = jax.nn.softmax(attn, axis=-1)
    o = jnp.einsum("bhqk,bhkd->bhqd", attn, v)
    o = jnp.transpose(o, (0, 2, 1, 3)).reshape(B, N, C)
    return o @ params["w_proj"] + params["b_proj"]


if __name__ == "__main__":
    def run_case(B, N, C, H, tol, q_tile_cap=256):
        key = jax.random.PRNGKey(0)
        kx, k1, k2, k3, k4 = jax.random.split(key, 5)
        x = jax.random.normal(kx, (B, N, C), dtype=jnp.float32)
        params = {
            "w_qkv": jax.random.normal(k1, (C, 3 * C), dtype=jnp.float32) * 0.05,
            "b_qkv": jax.random.normal(k2, (3 * C,), dtype=jnp.float32) * 0.01,
            "w_proj": jax.random.normal(k3, (C, C), dtype=jnp.float32) * 0.05,
            "b_proj": jax.random.normal(k4, (C,), dtype=jnp.float32) * 0.01,
        }
        out = jax.block_until_ready(
            multi_head_attention_forward(x, params, H, q_tile_cap=q_tile_cap))
        ref = reference_forward(x, params, H)
        assert out.shape == (B, N, C)
        # Tolerance accounts for bf16 activations / MXU inputs (f32 accumulation).
        assert jnp.allclose(out, ref, atol=tol, rtol=tol), (
            "mismatch", (B, N, C, H), float(jnp.max(jnp.abs(out - ref))))

    # Small shapes: whole-slab attention path, full-dim linear blocks.
    run_case(B=2, N=8, C=32, H=4, tol=2e-2)

    # ViT-like shapes: exercises cdiv ragged linear tiles (M = 2*197),
    # lane-aligned q/k/v column BlockSpecs and the q-tiled attention path
    # (ragged last q tile with tq=128).
    run_case(B=2, N=197, C=256, H=4, tol=5e-2, q_tile_cap=128)

    print("KERNEL_OK")
</pallas_src>

<mosaic_0001>
module attributes {stable_mosaic.version = 11 : i64} {
  func.func @_linear_kernel(%arg0: i32, %arg1: i32, %arg2: memref<16x32xf32, #tpu.memory_space<vmem>>, %arg3: memref<32x96xf32, #tpu.memory_space<vmem>>, %arg4: memref<1x96xf32, #tpu.memory_space<vmem>>, %arg5: memref<16x96xbf16, #tpu.memory_space<vmem>>) attributes {dimension_semantics = [#tpu.dimension_semantics<parallel>, #tpu.dimension_semantics<parallel>], iteration_bounds = array<i64: 1, 1>, scalar_prefetch = 0 : i64, scratch_operands = 0 : i64, tpu.core_type = #tpu.core_type<tc>, window_params = [{transform_indices = @transform_0, window_bounds = array<i64: 16, 32>}, {transform_indices = @transform_1, window_bounds = array<i64: 32, 96>}, {transform_indices = @transform_2, window_bounds = array<i64: 1, 96>}, {transform_indices = @transform_3, window_bounds = array<i64: 16, 96>}]} {
    %c0 = arith.constant 0 : index
    %c0_0 = arith.constant 0 : index
    %0 = vector.load %arg2[%c0, %c0_0] : memref<16x32xf32, #tpu.memory_space<vmem>>, vector<16x32xf32>
    %1 = arith.truncf %0 : vector<16x32xf32> to vector<16x32xbf16>
    %c0_1 = arith.constant 0 : index
    %c0_2 = arith.constant 0 : index
    %2 = vector.load %arg3[%c0_1, %c0_2] : memref<32x96xf32, #tpu.memory_space<vmem>>, vector<32x96xf32>
    %3 = arith.truncf %2 : vector<32x96xf32> to vector<32x96xbf16>
    %cst = arith.constant dense<0.000000e+00> : vector<16x96xf32>
    %4 = tpu.matmul %1, %3, %cst {dimension_numbers = #tpu.dot_dimension_numbers<[1], [0], [0], [1], [0, 0, 1, 1], [], []>} : vector<16x32xbf16>, vector<32x96xbf16>, vector<16x96xf32> -> vector<16x96xf32>
    %c0_3 = arith.constant 0 : index
    %c0_4 = arith.constant 0 : index
    %5 = vector.load %arg4[%c0_3, %c0_4] : memref<1x96xf32, #tpu.memory_space<vmem>>, vector<1x96xf32>
    %6 = vector.broadcast %5 : vector<1x96xf32> to vector<16x96xf32>
    %7 = arith.addf %4, %6 : vector<16x96xf32>
    %8 = arith.truncf %7 : vector<16x96xf32> to vector<16x96xbf16>
    %c0_5 = arith.constant 0 : index
    %c0_6 = arith.constant 0 : index
    %9 = vector.load %arg5[%c0_5, %c0_6] : memref<16x96xbf16, #tpu.memory_space<vmem>>, vector<16x96xbf16>
    tpu.vector_store %arg5[%c0_5, %c0_6], %8 {strides = array<i32>} : memref<16x96xbf16, #tpu.memory_space<vmem>>, vector<16x96xbf16>,
    return
  }
  func.func @transform_0(%arg0: i32, %arg1: i32) -> (i32, i32) {
    %c0_i32 = arith.constant 0 : i32
    %c0_i32_0 = arith.constant 0 : i32
    return %arg0, %c0_i32 : i32, i32
  }
  func.func @transform_1(%arg0: i32, %arg1: i32) -> (i32, i32) {
    %c0_i32 = arith.constant 0 : i32
    %c0_i32_0 = arith.constant 0 : i32
    return %c0_i32, %arg1 : i32, i32
  }
  func.func @transform_2(%arg0: i32, %arg1: i32) -> (i32, i32) {
    %c0_i32 = arith.constant 0 : i32
    %c0_i32_0 = arith.constant 0 : i32
    return %c0_i32, %arg1 : i32, i32
  }
  func.func @transform_3(%arg0: i32, %arg1: i32) -> (i32, i32) {
    %c0_i32 = arith.constant 0 : i32
    return %arg0, %arg1 : i32, i32
  }
}

</mosaic_0001>

<bundles_post_ra>
// kernel: tpu_custom_call.1
= control target key start
LH: loop header
LB: loop body
LE: loop exit
PB: predicated region body
PF: predicated region fallthrough
CT: control target
= control target key end

     0   :  { %8 = vsyncpa [#allocation3], 0  ;;  %s230_s0 = inlined_call_operand.hbm [shape: f32[16,32], index: 0, kind: input, shape index: {}]   ;;  %s231_s1 = inlined_call_operand.hbm [shape: f32[32,96], index: 1, kind: input, shape index: {}]   ;;  %s232_s2 = inlined_call_operand.vmem [shape: f32[1,96], index: 2, kind: input, shape index: {}]   ;;  %s233_s3 = inlined_call_operand.hbm [shape: bf16[16,96], index: 3, kind: output, shape index: {}]  }
   0x1   :  { %9 = vsyncpa [#allocation6], 0 }
   0x2   :  { %10 = vsyncpa [#allocation4], 0  ;;  %s15_s14 = sshll.u32 %s230_s0, 4  ;;  %s191_s15 = smov [#allocation2]   ;;  %s16_s14 = int_to_ptr.hbm [resolvable:$true] %s15_s14 }
   0x3   :  { %s17_s16 = sshll.u32 %s191_s15, 4  ;;  %s28_s19 = sshll.u32 %s231_s1, 4  ;;  %s18_s16 = int_to_ptr.vmem [resolvable:$true] %s17_s16  ;;  %s29_s19 = int_to_ptr.hbm [resolvable:$true] %s28_s19 }
   0x4   :  { %s192_s20 = smov 128   ;;  %s193_s21 = smov 8  }
   0x5   :  { %23 = dma.hbm_to_vmem [thread:$0]  %s16_s14, 256, %s18_s16, [#allocation3], %s192_s20, %s192_s20, %s193_s21  }
   0x6   :  { %s194_s22 = smov [#allocation5]  }
   0x7   :  { %s30_s23 = sshll.u32 %s194_s22, 4  ;;  %s31_s23 = int_to_ptr.vmem [resolvable:$true] %s30_s23 }
   0x8   :  { %36 = dma.hbm_to_vmem [thread:$0]  %s29_s19, 512, %s31_s23, [#allocation6], %s192_s20, %s192_s20, %s193_s21  }
   0x9   :  { %185 = dma.done.wait [#allocation3], 256  }
   0xa   :  { %186 = vsyncadd [#allocation3], 4294967040 }
   0xb   :  { %187 = dma.done.wait [#allocation6], 512  }
   0xc   :  { %188 = vsyncadd [#allocation6], 4294966784  ;;  %v53_v0 = vld [vmem:[#allocation5 + $0x10] sm:$0xff]  ;;  %v54_v1 = vld [vmem:[#allocation5 + $0x18] sm:$0xff]  ;;  %vm61_vm0 = vcmask 261120   ;;  %vm81_vm1 = vcmask 781312  }
   0xd   :  { %v51_v2 = vld [vmem:[#allocation5] sm:$0xff]  ;;  %v56_v3 = vpack.c.bf16 %v54_v1, %v53_v0  ;;  %v52_v4 = vld [vmem:[#allocation5 + $0x8] sm:$0xff]  ;;  %v48_v6 = vld [vmem:[#allocation2] sm:$0xff]  ;;  %s195_s24 = smov [#allocation7]   ;;  %s90_s28 = sshll.u32 %s233_s3, 4  ;;  %s91_s28 = int_to_ptr.hbm [resolvable:$true] %s90_s28 }
   0xe   :  { %v55_v5 = vpack.c.bf16 %v52_v4, %v51_v2  ;;  %v49_v7 = vld [vmem:[#allocation2 + $0x8] sm:$0xff]  ;;  %v112_v9 = vld [vmem:[%s232_s2] ss:$0 sm:$0xff]  ;;  %s88_s25 = sshll.u32 %s195_s24, 4  ;;  %s196_s29 = smov 64   ;;  %s89_s25 = int_to_ptr.vmem [resolvable:$true] %s88_s25 }
   0xf   :  { %71 = vmatpush.bf16.msra.mxu0 %v56_v3  ;;  %v50_v8 = vpack.c.bf16 %v49_v7, %v48_v6  ;;  %s197_s30 = smov 4  }
  0x13   :  { %72 = vmatpush.bf16.msra.mxu0 %v55_v5 }
  0x16   :  { %104 = vmatmul.msk.bf16.vlgmr.msra.gmra.mxu0 %vm61_vm0, %v50_v8 }
  0x93   :  { %v74_v10 = vpop.f32.mrf.mxu0 }
  0x94   :  { %v75_v11 = vadd.f32 %v112_v9, %v74_v10 }
  0x96   :  { %v79_v12 = vpack.c.bf16 %v75_v11, %v75_v11 }
  0x98   :  { %82 = vst.msk [vmem:[#allocation7] sm:$0xf] %vm81_vm1, %v79_v12 }
  0x9b   :  { %v76_v13 = vpop.f32.mrf.mxu0 }
  0x9c   :  { %v77_v14 = vadd.f32 %v112_v9, %v76_v13 }
  0x9e   :  { %v80_v15 = vpack.c.bf16 %v77_v14, %v77_v14 }
  0xa0   :  { %83 = vst.msk [vmem:[#allocation7 + $0x4] sm:$0xf] %vm81_vm1, %v80_v15 }
  0xa1   :  { %96 = dma.vmem_to_hbm [thread:$0]  %s89_s25, 128, %s91_s28, [#allocation4], %s196_s29, %s196_s29, %s197_s30  }
  0xa2   :  { %189 = dma.done.wait [#allocation4], 128  }
  0xa3   :  { %190 = vsyncadd [#allocation4], 4294967168 }
  0xa4   :  { %101 = vsyncpa [#allocation3], 1 }
  0xa5   :  { %102 = vsyncpa [#allocation6], 1 }
  0xa6   :  { %103 = vsyncpa [#allocation4], 1 }

</bundles_post_ra>
